<compile_context>
chip_gen: v7x
topology: tpu7x:2x2x1
jax: 0.10.0
libtpu: 0.0.40
codegen_flags: <defaults>
</compile_context>

<pallas_src>
import math
import functools

import jax
import jax.numpy as jnp
from jax.experimental import pallas as pl
from jax.experimental.pallas import tpu as pltpu


def _pick_tile(dim, target):
    """Largest clean tile <= target that divides dim, else the full dim.

    Used for weight dims (d_model / 3*d_model) and the sequence axis, which are
    normally multiples of the targets; the M axis of the linears is padded
    instead (see linear_pallas) so its block never exceeds the target.
    """
    t = min(dim, target)
    return t if dim % t == 0 else dim


# ----------------------------------------------------------------------------
# Tiled linear kernel:  y = x @ Wt + b
#   x: bf16 [M, Din],  Wt: bf16 [Din, Dout] (pre-transposed, pre-cast),  b: f32
# ----------------------------------------------------------------------------
def _linear_kernel(x_ref, wt_ref, b_ref, o_ref, acc_ref):
    k = pl.program_id(2)

    @pl.when(k == 0)
    def _init():
        acc_ref[...] = jnp.zeros_like(acc_ref)

    # bf16 MXU inputs (already bf16 in HBM), f32 accumulation.
    acc_ref[...] += jnp.dot(
        x_ref[...], wt_ref[...], preferred_element_type=jnp.float32)

    @pl.when(k == pl.num_programs(2) - 1)
    def _finalize():
        o_ref[...] = (acc_ref[...] + b_ref[...]).astype(o_ref.dtype)


def linear_pallas(x2d, wt, bias, *, out_dtype=jnp.bfloat16,
                  tm=512, tn=256, tk=512):
    """x2d: [M, Din]; wt: kernel-ready bf16 [Din, Dout]; bias: [Dout] f32."""
    M, Din = x2d.shape
    Dout = wt.shape[1]
    x2d = x2d.astype(jnp.bfloat16)
    b = bias.astype(jnp.float32).reshape(1, Dout)

    # Bound tm by its target: pad M rather than collapsing to one full-M block
    # (keeps VMEM bounded when B*S is not a multiple of the tile).
    if M <= tm:
        tm_eff, Mp = M, M
    elif M % tm == 0:
        tm_eff, Mp = tm, M
    else:
        tm_eff = tm
        Mp = ((M + tm - 1) // tm) * tm
        x2d = jnp.pad(x2d, ((0, Mp - M), (0, 0)))

    tn = _pick_tile(Dout, tn)
    tk = _pick_tile(Din, tk)
    grid = (Mp // tm_eff, Dout // tn, Din // tk)

    out_bytes = jnp.dtype(out_dtype).itemsize
    cost = pl.CostEstimate(
        flops=2 * Mp * Dout * Din,
        transcendentals=0,
        bytes_accessed=(Mp * Din * 2
                        + (Mp // tm_eff) * Din * Dout * 2
                        + Mp * Dout * out_bytes
                        + Dout * 4),
    )

    out = pl.pallas_call(
        _linear_kernel,
        out_shape=jax.ShapeDtypeStruct((Mp, Dout), out_dtype),
        grid_spec=pltpu.PrefetchScalarGridSpec(
            num_scalar_prefetch=0,
            grid=grid,
            in_specs=[
                pl.BlockSpec((tm_eff, tk), lambda i, j, k: (i, k)),
                pl.BlockSpec((tk, tn), lambda i, j, k: (k, j)),
                pl.BlockSpec((1, tn), lambda i, j, k: (0, j)),
            ],
            out_specs=pl.BlockSpec((tm_eff, tn), lambda i, j, k: (i, j)),
            scratch_shapes=[pltpu.VMEM((tm_eff, tn), jnp.float32)],
        ),
        compiler_params=pltpu.CompilerParams(
            dimension_semantics=("parallel", "parallel", "arbitrary"),
            # Working set (bf16 tiles, double-buffered, + f32 acc) is a few MiB;
            # 48 MiB scoped fits v5e/v6e (128 MiB) and leaves headroom on
            # v7x's 64 MiB VMEM.
            vmem_limit_bytes=48 * 1024 * 1024,
        ),
        cost_estimate=cost,
    )(x2d, wt, b)
    return out[:M] if Mp != M else out


# ----------------------------------------------------------------------------
# Flash attention kernel (online softmax), heads packed along the lane dim.
#   inputs/outputs: bf16 [B, S, D] with D = heads * d_k
#   grid: (batch, q-tiles, kv-tiles); kv axis is the reduction ("arbitrary").
# ----------------------------------------------------------------------------
def _attn_kernel(q_ref, k_ref, v_ref, o_ref, m_sc, l_sc, acc_sc, qc_sc, *,
                 scale, heads, dk):
    kv_idx = pl.program_id(2)

    @pl.when(kv_idx == 0)
    def _init():
        m_sc[...] = jnp.full_like(m_sc, -jnp.inf)
        l_sc[...] = jnp.zeros_like(l_sc)
        acc_sc[...] = jnp.zeros_like(acc_sc)
        # Cache per-head Q slices ONCE per q tile with 1/sqrt(d_k) folded in:
        # avoids the lane-slice relayout + scale repeating every kv step, and
        # scales the [tq, dk] operand instead of the [tq, tk] scores.
        for hh in range(heads):
            lo = hh * dk
            qc_sc[hh] = (q_ref[0, :, lo:lo + dk].astype(jnp.float32) * scale
                         ).astype(jnp.bfloat16)

    for hh in range(heads):
        lo = hh * dk
        qh = qc_sc[hh]                    # [tq, dk] bf16, pre-scaled
        kh = k_ref[0, :, lo:lo + dk]      # [tk, dk] bf16
        vh = v_ref[0, :, lo:lo + dk]      # [tk, dk] bf16

        # QK^T via dot_general contracting d_k directly (no explicit k.T).
        s = jax.lax.dot_general(
            qh, kh,
            dimension_numbers=(((1,), (1,)), ((), ())),
            preferred_element_type=jnp.float32,
        )                                 # [tq, tk] f32

        m_prev = m_sc[hh]                 # [tq, 1]
        l_prev = l_sc[hh]                 # [tq, 1]
        acc_prev = acc_sc[hh]             # [tq, dk]

        # Softmax bookkeeping stays f32 (v5e EUP has no bf16).
        m_new = jnp.maximum(m_prev, jnp.max(s, axis=-1, keepdims=True))
        alpha = jnp.exp(m_prev - m_new)
        p = jnp.exp(s - m_new)

        l_sc[hh] = alpha * l_prev + jnp.sum(p, axis=-1, keepdims=True)
        acc_sc[hh] = alpha * acc_prev + jnp.dot(
            p.astype(jnp.bfloat16), vh, preferred_element_type=jnp.float32)
        m_sc[hh] = m_new

    @pl.when(kv_idx == pl.num_programs(2) - 1)
    def _finalize():
        for hh in range(heads):
            # Approx EUP reciprocal; safe here since l > 0 with no mask.
            inv_l = pl.reciprocal(l_sc[hh], approx=True)
            o_ref[0, :, hh * dk:(hh + 1) * dk] = (
                acc_sc[hh] * inv_l).astype(o_ref.dtype)


def attention_pallas(q, k, v, heads, dk, *, tq=256, tk=256):
    """q, k, v: [B, S, D] (heads packed in last dim) -> bf16 [B, S, D]."""
    B, S, D = q.shape
    assert D == heads * dk
    q = q.astype(jnp.bfloat16)
    k = k.astype(jnp.bfloat16)
    v = v.astype(jnp.bfloat16)

    tq = _pick_tile(S, tq)
    tk = _pick_tile(S, tk)
    scale = 1.0 / math.sqrt(dk)
    kern = functools.partial(_attn_kernel, scale=scale, heads=heads, dk=dk)
    grid = (B, S // tq, S // tk)

    nq = S // tq
    cost = pl.CostEstimate(
        flops=4 * B * S * S * D,                       # QK^T + PV
        transcendentals=B * heads * S * S,             # exp(p)
        bytes_accessed=(B * S * D * 2                  # Q
                        + 2 * B * S * D * 2 * nq       # K/V refetched per q tile
                        + B * S * D * 2),              # out
    )

    return pl.pallas_call(
        kern,
        out_shape=jax.ShapeDtypeStruct((B, S, D), jnp.bfloat16),
        grid_spec=pltpu.PrefetchScalarGridSpec(
            num_scalar_prefetch=0,
            grid=grid,
            in_specs=[
                pl.BlockSpec((1, tq, D), lambda b, qi, ki: (b, qi, 0)),
                pl.BlockSpec((1, tk, D), lambda b, qi, ki: (b, ki, 0)),
                pl.BlockSpec((1, tk, D), lambda b, qi, ki: (b, ki, 0)),
            ],
            out_specs=pl.BlockSpec((1, tq, D), lambda b, qi, ki: (b, qi, 0)),
            scratch_shapes=[
                pltpu.VMEM((heads, tq, 1), jnp.float32),      # running max m
                pltpu.VMEM((heads, tq, 1), jnp.float32),      # running sum l
                pltpu.VMEM((heads, tq, dk), jnp.float32),     # accumulator
                pltpu.VMEM((heads, tq, dk), jnp.bfloat16),    # scaled-Q cache
            ],
        ),
        compiler_params=pltpu.CompilerParams(
            dimension_semantics=("parallel", "parallel", "arbitrary"),
            vmem_limit_bytes=48 * 1024 * 1024,
        ),
        cost_estimate=cost,
    )(q, k, v)


# ----------------------------------------------------------------------------
# One-time parameter preparation + module forward (glue in plain JAX)
# ----------------------------------------------------------------------------
def prepare_params(params):
    """Convert PyTorch-layout params (W [Dout,Din], b [Dout]) into kernel-ready
    operands ONCE: transposed bf16 weights and a fused [Din, 3D] QKV weight.
    """
    (Wq, bq), (Wk, bk), (Wv, bv), (Wo, bo) = params
    wq_t = jnp.asarray(Wq.T, jnp.bfloat16)
    wk_t = jnp.asarray(Wk.T, jnp.bfloat16)
    wv_t = jnp.asarray(Wv.T, jnp.bfloat16)
    wo_t = jnp.asarray(Wo.T, jnp.bfloat16)
    return {
        "wq_t": wq_t, "wk_t": wk_t, "wv_t": wv_t, "wo_t": wo_t,
        "bq": jnp.asarray(bq, jnp.float32),
        "bk": jnp.asarray(bk, jnp.float32),
        "bv": jnp.asarray(bv, jnp.float32),
        "bo": jnp.asarray(bo, jnp.float32),
        "wqkv_t": jnp.concatenate([wq_t, wk_t, wv_t], axis=1),          # [Din, 3D]
        "bqkv": jnp.concatenate([jnp.asarray(bq, jnp.float32),
                                 jnp.asarray(bk, jnp.float32),
                                 jnp.asarray(bv, jnp.float32)], axis=0),
    }


def mha_forward(prep, query, key, value, h, d_k):
    """query/key/value: [B, S, D].  prep: output of prepare_params."""
    B, S, D = query.shape
    q2 = query.reshape(B * S, D).astype(jnp.bfloat16)

    if (query is key) and (query is value):
        # Fused QKV projection: one tiled matmul with the pre-fused [Din, 3D] weight.
        qkv = linear_pallas(q2, prep["wqkv_t"], prep["bqkv"])           # [B*S, 3D] bf16
        Q = qkv[:, :D].reshape(B, S, D)
        K = qkv[:, D:2 * D].reshape(B, S, D)
        V = qkv[:, 2 * D:].reshape(B, S, D)
    else:
        k2 = key.reshape(B * S, D).astype(jnp.bfloat16)
        v2 = value.reshape(B * S, D).astype(jnp.bfloat16)
        Q = linear_pallas(q2, prep["wq_t"], prep["bq"]).reshape(B, S, D)
        K = linear_pallas(k2, prep["wk_t"], prep["bk"]).reshape(B, S, D)
        V = linear_pallas(v2, prep["wv_t"], prep["bv"]).reshape(B, S, D)

    # Attention in the lane-dense [B, S, D] layout (no [B,H,S,d_k] HBM round trips).
    x = attention_pallas(Q, K, V, h, d_k)                               # [B, S, D] bf16
    out = linear_pallas(x.reshape(B * S, D), prep["wo_t"], prep["bo"],
                        out_dtype=jnp.float32).reshape(B, S, D)
    return out


def init_params(key, d_model):
    """Deterministic nn.Linear-style init: U(-1/sqrt(fan_in), 1/sqrt(fan_in))."""
    params = []
    bound = 1.0 / math.sqrt(d_model)
    for i in range(4):
        kw, kb = jax.random.split(jax.random.fold_in(key, i))
        W = jax.random.uniform(kw, (d_model, d_model), jnp.float32, -bound, bound)
        b = jax.random.uniform(kb, (d_model,), jnp.float32, -bound, bound)
        params.append((W, b))
    return params


def mha_reference(params, query, key, value, h, d_k):
    """Pure-JAX f32 reference mirroring the PyTorch module (eval mode)."""
    B, S, D = query.shape

    def lin(x, W, b):
        return x @ W.T + b

    def proj(x, W, b):
        return lin(x, W, b).reshape(B, S, h, d_k).transpose(0, 2, 1, 3)

    Q = proj(query, *params[0])
    K = proj(key, *params[1])
    V = proj(value, *params[2])
    s = jnp.einsum("bhqd,bhkd->bhqk", Q, K) / math.sqrt(d_k)
    p = jax.nn.softmax(s, axis=-1)
    x = jnp.einsum("bhqk,bhkd->bhqd", p, V)
    x = x.transpose(0, 2, 1, 3).reshape(B, S, D)
    return lin(x, *params[3])


if __name__ == "__main__":
    B, S, d_model, h = 2, 8, 32, 4
    d_k = d_model // h

    root = jax.random.PRNGKey(0)
    kq, kk, kv, kp = jax.random.split(root, 4)
    query = jax.random.normal(kq, (B, S, d_model), jnp.float32)
    key_in = jax.random.normal(kk, (B, S, d_model), jnp.float32)
    value = jax.random.normal(kv, (B, S, d_model), jnp.float32)
    params = init_params(kp, d_model)
    prep = prepare_params(params)

    # bf16 weights + bf16 activation carry (f32 accumulation): expect ~1e-2 deviation.
    TOL = 5e-2

    # General path (distinct q/k/v -> three projection matmuls).
    out = jax.block_until_ready(mha_forward(prep, query, key_in, value, h, d_k))
    ref = mha_reference(params, query, key_in, value, h, d_k)
    assert out.shape == (B, S, d_model)
    assert jnp.allclose(out, ref, atol=TOL, rtol=TOL), (
        "mismatch vs reference: max abs diff = "
        f"{float(jnp.max(jnp.abs(out - ref)))}")

    # Self-attention path (exercises the fused QKV projection).
    out_sa = jax.block_until_ready(mha_forward(prep, query, query, query, h, d_k))
    ref_sa = mha_reference(params, query, query, query, h, d_k)
    assert jnp.allclose(out_sa, ref_sa, atol=TOL, rtol=TOL), (
        "fused-QKV mismatch vs reference: max abs diff = "
        f"{float(jnp.max(jnp.abs(out_sa - ref_sa)))}")

    print("KERNEL_OK")
</pallas_src>

<mosaic_0001>
module attributes {stable_mosaic.version = 11 : i64} {
  func.func @_linear_kernel(%arg0: i32, %arg1: i32, %arg2: i32, %arg3: memref<16x32xbf16, #tpu.memory_space<vmem>>, %arg4: memref<32x32xbf16, #tpu.memory_space<vmem>>, %arg5: memref<1x32xf32, #tpu.memory_space<vmem>>, %arg6: memref<16x32xbf16, #tpu.memory_space<vmem>>, %arg7: memref<16x32xf32, #tpu.memory_space<vmem>>) attributes {dimension_semantics = [#tpu.dimension_semantics<parallel>, #tpu.dimension_semantics<parallel>, #tpu.dimension_semantics<arbitrary>], iteration_bounds = array<i64: 1, 1, 1>, scalar_prefetch = 0 : i64, scratch_operands = 1 : i64, tpu.core_type = #tpu.core_type<tc>, window_params = [{transform_indices = @transform_0, window_bounds = array<i64: 16, 32>}, {transform_indices = @transform_1, window_bounds = array<i64: 32, 32>}, {transform_indices = @transform_2, window_bounds = array<i64: 1, 32>}, {transform_indices = @transform_3, window_bounds = array<i64: 16, 32>}]} {
    %c0_i32 = arith.constant 0 : i32
    %0 = arith.cmpi eq, %arg2, %c0_i32 : i32
    %1 = arith.extui %0 : i1 to i32
    %c0_i32_0 = arith.constant 0 : i32
    %2 = arith.cmpi ne, %1, %c0_i32_0 : i32
    scf.if %2 {
      %cst_10 = arith.constant 0.000000e+00 : f32
      %12 = vector.broadcast %cst_10 : f32 to vector<16x32xf32>
      %c0_11 = arith.constant 0 : index
      %c0_12 = arith.constant 0 : index
      %13 = vector.load %arg7[%c0_11, %c0_12] : memref<16x32xf32, #tpu.memory_space<vmem>>, vector<16x32xf32>
      tpu.vector_store %arg7[%c0_11, %c0_12], %12 {strides = array<i32>} : memref<16x32xf32, #tpu.memory_space<vmem>>, vector<16x32xf32>,
    } else {
    }
    %c0 = arith.constant 0 : index
    %c0_1 = arith.constant 0 : index
    %3 = vector.load %arg7[%c0, %c0_1] : memref<16x32xf32, #tpu.memory_space<vmem>>, vector<16x32xf32>
    %c0_2 = arith.constant 0 : index
    %c0_3 = arith.constant 0 : index
    %4 = vector.load %arg3[%c0_2, %c0_3] : memref<16x32xbf16, #tpu.memory_space<vmem>>, vector<16x32xbf16>
    %c0_4 = arith.constant 0 : index
    %c0_5 = arith.constant 0 : index
    %5 = vector.load %arg4[%c0_4, %c0_5] : memref<32x32xbf16, #tpu.memory_space<vmem>>, vector<32x32xbf16>
    %cst = arith.constant dense<0.000000e+00> : vector<16x32xf32>
    %6 = tpu.matmul %4, %5, %cst {dimension_numbers = #tpu.dot_dimension_numbers<[1], [0], [0], [1], [0, 0, 1, 1], [], []>} : vector<16x32xbf16>, vector<32x32xbf16>, vector<16x32xf32> -> vector<16x32xf32>
    %7 = arith.addf %3, %6 : vector<16x32xf32>
    %c0_6 = arith.constant 0 : index
    %c0_7 = arith.constant 0 : index
    %8 = vector.load %arg7[%c0_6, %c0_7] : memref<16x32xf32, #tpu.memory_space<vmem>>, vector<16x32xf32>
    tpu.vector_store %arg7[%c0_6, %c0_7], %7 {strides = array<i32>} : memref<16x32xf32, #tpu.memory_space<vmem>>, vector<16x32xf32>,
    %c0_i32_8 = arith.constant 0 : i32
    %9 = arith.cmpi eq, %arg2, %c0_i32_8 : i32
    %10 = arith.extui %9 : i1 to i32
    %c0_i32_9 = arith.constant 0 : i32
    %11 = arith.cmpi ne, %10, %c0_i32_9 : i32
    scf.if %11 {
      %c0_10 = arith.constant 0 : index
      %c0_11 = arith.constant 0 : index
      %12 = vector.load %arg7[%c0_10, %c0_11] : memref<16x32xf32, #tpu.memory_space<vmem>>, vector<16x32xf32>
      %c0_12 = arith.constant 0 : index
      %c0_13 = arith.constant 0 : index
      %13 = vector.load %arg5[%c0_12, %c0_13] : memref<1x32xf32, #tpu.memory_space<vmem>>, vector<1x32xf32>
      %14 = vector.broadcast %13 : vector<1x32xf32> to vector<16x32xf32>
      %15 = arith.addf %12, %14 : vector<16x32xf32>
      %16 = arith.truncf %15 : vector<16x32xf32> to vector<16x32xbf16>
      %c0_14 = arith.constant 0 : index
      %c0_15 = arith.constant 0 : index
      %17 = vector.load %arg6[%c0_14, %c0_15] : memref<16x32xbf16, #tpu.memory_space<vmem>>, vector<16x32xbf16>
      tpu.vector_store %arg6[%c0_14, %c0_15], %16 {strides = array<i32>} : memref<16x32xbf16, #tpu.memory_space<vmem>>, vector<16x32xbf16>,
    } else {
    }
    return
  }
  func.func @transform_0(%arg0: i32, %arg1: i32, %arg2: i32) -> (i32, i32) {
    %c0_i32 = arith.constant 0 : i32
    return %arg0, %arg2 : i32, i32
  }
  func.func @transform_1(%arg0: i32, %arg1: i32, %arg2: i32) -> (i32, i32) {
    %c0_i32 = arith.constant 0 : i32
    return %arg2, %arg1 : i32, i32
  }
  func.func @transform_2(%arg0: i32, %arg1: i32, %arg2: i32) -> (i32, i32) {
    %c0_i32 = arith.constant 0 : i32
    %c0_i32_0 = arith.constant 0 : i32
    return %c0_i32, %arg1 : i32, i32
  }
  func.func @transform_3(%arg0: i32, %arg1: i32, %arg2: i32) -> (i32, i32) {
    %c0_i32 = arith.constant 0 : i32
    return %arg0, %arg1 : i32, i32
  }
}

</mosaic_0001>

<bundles_post_ra>
// kernel: tpu_custom_call.1
= control target key start
LH: loop header
LB: loop body
LE: loop exit
PB: predicated region body
PF: predicated region fallthrough
CT: control target
= control target key end

     0   :  { %8 = vsyncpa [#allocation4], 0  ;;  %s350_s0 = inlined_call_operand.hbm [shape: bf16[16,32], index: 0, kind: input, shape index: {}]   ;;  %s351_s1 = inlined_call_operand.hbm [shape: bf16[32,32], index: 1, kind: input, shape index: {}]   ;;  %s352_s2 = inlined_call_operand.vmem [shape: f32[1,32], index: 2, kind: input, shape index: {}]   ;;  %s353_s3 = inlined_call_operand.hbm [shape: bf16[16,32], index: 3, kind: output, shape index: {}]  }
   0x1   :  { %9 = vsyncpa [#allocation7], 0 }
   0x2   :  { %10 = vsyncpa [#allocation5], 0  ;;  %s270_s12 = smov [#allocation3]   ;;  %s198_s16 = scalar_lea.hbm %s350_s0, 128 }
   0x3   :  { %s16_s13 = sshll.u32 %s270_s12, 4  ;;  %p199_p0 = scmp.ne.s32.totalorder %s350_s0, %s198_s16  ;;  %s17_s13 = int_to_ptr.vmem [resolvable:$true] %s16_s13 }
   0x4   :  { %p202_p1 = scmp.lt.u32.totalorder %s198_s16, %s350_s0 }
   0x6   :  { %p204_p2 = pnand %p202_p1, %p199_p0 }
   0x8   :  { %207 = shalt.err (!%p204_p2)
}
   0x9   :  { %s208_s21 = scalar_lea.vmem %s17_s13, 128  ;;  %p213_p4 = scmp.lt.s32.totalorder %s17_s13, %s17_s13 }
   0xa   :  { %p209_p3 = scmp.ne.s32.totalorder %s17_s13, %s208_s21  ;;  %p214_p5 = scmp.lt.s32.totalorder %s208_s21, %s208_s21 }
   0xc   :  { %p215_p6 = por %p214_p5, %p213_p4 }
   0xe   :  { %p216_p7 = pnand %p215_p6, %p209_p3 }
  0x10   :  { %219 = shalt.err (!%p216_p7)
}
  0x11   :  { %s271_s22 = smov 64   ;;  %s272_s23 = smov 4  }
  0x12   :  { %22 = dma.hbm_to_vmem [thread:$0]  %s350_s0, 128, %s17_s13, [#allocation4], %s271_s22, %s271_s22, %s272_s23  }
  0x13   :  { %s273_s26 = smov [#allocation6]   ;;  %s220_s30 = scalar_lea.hbm %s351_s1, 256 }
  0x14   :  { %s28_s27 = sshll.u32 %s273_s26, 4  ;;  %p221_p8 = scmp.ne.s32.totalorder %s351_s1, %s220_s30  ;;  %s29_s27 = int_to_ptr.vmem [resolvable:$true] %s28_s27 }
  0x15   :  { %p224_p9 = scmp.lt.u32.totalorder %s220_s30, %s351_s1 }
  0x17   :  { %p226_p10 = pnand %p224_p9, %p221_p8 }
  0x19   :  { %229 = shalt.err (!%p226_p10)
}
  0x1a   :  { %s230_s8 = scalar_lea.vmem %s29_s27, 256  ;;  %p235_p12 = scmp.lt.s32.totalorder %s29_s27, %s29_s27 }
  0x1b   :  { %p231_p11 = scmp.ne.s32.totalorder %s29_s27, %s230_s8  ;;  %p236_p13 = scmp.lt.s32.totalorder %s230_s8, %s230_s8 }
  0x1d   :  { %p237_p0 = por %p236_p13, %p235_p12 }
  0x1f   :  { %p238_p1 = pnand %p237_p0, %p231_p11 }
  0x21   :  { %241 = shalt.err (!%p238_p1)
}
  0x22   :  { %34 = dma.hbm_to_vmem [thread:$0]  %s351_s1, 256, %s29_s27, [#allocation7], %s271_s22, %s271_s22, %s272_s23  }
  0x23   :  { %264 = dma.done.wait [#allocation4], 128  }
  0x24   :  { %265 = vsyncadd [#allocation4], 4294967168 }
  0x25   :  { %266 = dma.done.wait [#allocation7], 256  }
  0x26   :  { %267 = vsyncadd [#allocation7], 4294967040  ;;  %vm48_vm0 = vcmask 261120   ;;  %v274_v0 = vmov 0.0   ;;  %vm275_vm1 = vmmov 0   ;;  %v195_v1 = vld [vmem:[#allocation6] sm:$0xff]  }
  0x27   :  { %180 = vmatprep.subr.bf16.mxu0 %v274_v0  ;;  %184 = vmatprep.mubr.msk.bf16.mxu0 %vm275_vm1, %v274_v0  ;;  %49 = vst.msk [vmem:[#allocation2] sm:$0xff] %vm48_vm0, %v274_v0  ;;  %50 = vst.msk [vmem:[#allocation2 + $0x8] sm:$0xff] %vm48_vm0, %v274_v0  ;;  %v196_v2 = vld [vmem:[#allocation6 + $0x8] sm:$0xff]   ;;  %v197_v3 = vld [vmem:[#allocation3] sm:$0xff]   ;;  %vm147_vm2 = vcmask 257024   ;;  %s276_s11 = smov [#allocation8]  }
  0x28   :  { %181 = vmatpush3.bf16.msra.mxu0 %v195_v1  ;;  %v172_v12 = vld [vmem:[%s352_s2] ss:$0 sm:$0xff]  ;;  %s155_s12 = sshll.u32 %s276_s11, 4  ;;  %s156_s12 = int_to_ptr.vmem [resolvable:$true] %s155_s12 }
  0x29   :  { %182 = vmatprep.subr.bf16.mxu0 %v274_v0  ;;  %s242_s13 = scalar_lea.vmem %s156_s12, 128  ;;  %p247_p3 = scmp.lt.s32.totalorder %s156_s12, %s156_s12 }
  0x2a   :  { %p243_p2 = scmp.ne.s32.totalorder %s156_s12, %s242_s13  ;;  %p248_p4 = scmp.lt.s32.totalorder %s242_s13, %s242_s13 }
  0x2c   :  { %183 = vmatpush3.bf16.msra.mxu0 %v196_v2  ;;  %p249_p5 = por %p248_p4, %p247_p3 }
  0x2e   :  { %v51_v4 = vld [vmem:[#allocation2] sm:$0xff]  ;;  %v52_v6 = vld [vmem:[#allocation2 + $0x8] sm:$0xff]  ;;  %p250_p6 = pnand %p249_p5, %p243_p2 }
  0x2f   :  { %185 = vmatmul.mubr.msk.bf16.vlgmr.msra.gmra.mrb[0].mxu0 %vm48_vm0, %v197_v3 }
 0x102   :  { %v114_v5 = vpop.f32.mrb[0].mxu0 }
 0x103   :  { %v121_v7 = vadd.f32 %v114_v5, %v51_v4  ;;  %v186_v8 = vpop.f32.mrb[1].mxu0 }
 0x104   :  { %v117_v9 = vpop.f32.mrb[2].mxu0 }
 0x105   :  { %123 = vst.msk [vmem:[#allocation2] sm:$0xff] %vm48_vm0, %v121_v7  ;;  %v122_v10 = vadd.f32 %v117_v9, %v52_v6  ;;  %v187_v11 = vpop.f32.mrb[3].mxu0 }
 0x107   :  { %124 = vst.msk [vmem:[#allocation2 + $0x8] sm:$0xff] %vm48_vm0, %v122_v10 }
 0x10c   :  { %v128_v13 = vld [vmem:[#allocation2] sm:$0xff] }
 0x10d   :  { %v137_v14 = vadd.f32 %v172_v12, %v128_v13 }
 0x10e   :  { %v129_v15 = vld [vmem:[#allocation2 + $0x8] sm:$0xff] }
 0x10f   :  { %v138_v16 = vadd.f32 %v172_v12, %v129_v15  ;;  %v175_v17 = vpack.c.bf16 %v137_v14, %v137_v14 }
 0x111   :  { %v176_v18 = vpack.c.bf16 %v138_v16, %v138_v16  ;;  %148 = vst.msk [vmem:[#allocation8] sm:$0xf] %vm147_vm2, %v175_v17 }
 0x113   :  { %149 = vst.msk [vmem:[#allocation8 + $0x4] sm:$0xf] %vm147_vm2, %v176_v18 }
 0x114   :  { %253 = shalt.err (!%p250_p6)
}
 0x115   :  { %s254_s15 = scalar_lea.hbm %s353_s3, 128 }
 0x116   :  { %p255_p7 = scmp.ne.s32.totalorder %s353_s3, %s254_s15  ;;  %p258_p8 = scmp.lt.u32.totalorder %s254_s15, %s353_s3 }
 0x118   :  { %p260_p9 = pnand %p258_p8, %p255_p7 }
 0x11a   :  { %263 = shalt.err (!%p260_p9)
}
 0x11b   :  { %161 = dma.vmem_to_hbm [thread:$0]  %s156_s12, 128, %s353_s3, [#allocation5], %s271_s22, %s271_s22, %s272_s23  }
 0x11c   :  { %268 = dma.done.wait [#allocation5], 128  }
 0x11d   :  { %269 = vsyncadd [#allocation5], 4294967168 }
 0x11e   :  { %165 = vsyncpa [#allocation4], 1 }
 0x11f   :  { %166 = vsyncpa [#allocation7], 1 }
 0x120   :  { %167 = vsyncpa [#allocation5], 1 }

</bundles_post_ra>
